<compile_context>
chip_gen: v6e
topology: v6e:2x2x1
jax: 0.10.0
libtpu: 0.0.40
codegen_flags: <defaults>
</compile_context>

<pallas_src>
import functools

import jax
import jax.numpy as jnp
from jax.experimental import pallas as pl
from jax.experimental.pallas import tpu as pltpu

LANE = 128


def _round_up(v, m):
    return (v + m - 1) // m * m


def _layer_dims(input_length, hidden_size):
    enc = [(input_length, input_length // 2),
           (input_length // 2, input_length // 4),
           (input_length // 4, hidden_size)]
    dec = [(hidden_size, input_length // 4),
           (input_length // 4, input_length // 2),
           (input_length // 2, input_length)]
    return enc + dec + dec  # encoder, decoder_1, decoder_2 (9 linear layers)


def init_usad_params(key, input_length, hidden_size):
    """Deterministic parameter init (PyTorch nn.Linear default range).
    Returns a flat list [W0, b0, ..., W8, b8]; W is (in, out), b is (1, out)."""
    dims = _layer_dims(input_length, hidden_size)
    params = []
    keys = jax.random.split(key, 2 * len(dims))
    for i, (din, dout) in enumerate(dims):
        bound = 1.0 / jnp.sqrt(jnp.float32(din))
        w = jax.random.uniform(keys[2 * i], (din, dout), jnp.float32, -bound, bound)
        b = jax.random.uniform(keys[2 * i + 1], (1, dout), jnp.float32, -bound, bound)
        params += [w, b]
    return params


def pack_usad_params(params, input_length, hidden_size, matmul_dtype=jnp.bfloat16):
    """Pack the 9 (W, b) pairs into zero-padded, lane-dense slabs.

    Returns:
      w_slab: (9, P, P) in matmul_dtype (bf16 halves HBM->VMEM bytes)
      b_slab: (9, 1, P) float32
    with P = round_up(max(input_length, hidden_size), 128).
    """
    P = _round_up(max(input_length, hidden_size), LANE)
    dims = _layer_dims(input_length, hidden_size)
    w_slab = jnp.zeros((len(dims), P, P), jnp.float32)
    b_slab = jnp.zeros((len(dims), 1, P), jnp.float32)
    for k, (din, dout) in enumerate(dims):
        w_slab = w_slab.at[k, :din, :dout].set(params[2 * k])
        b_slab = b_slab.at[k, :, :dout].set(params[2 * k + 1])
    return w_slab.astype(matmul_dtype), b_slab


def usad_kernel(x_ref, w_ref, b_ref, o1_ref, o2_ref, o2t_ref):
    relu = lambda v: jnp.maximum(v, 0.0)
    sigm = jax.nn.sigmoid
    mm_dtype = w_ref.dtype  # bf16 (or f32) matmul inputs, f32 accumulation

    def layer(h, k, act):
        # MXU matmul with f32 accumulation; bias/activation in f32 (VPU/EUP).
        y = jnp.dot(h.astype(mm_dtype), w_ref[k],
                    preferred_element_type=jnp.float32)
        return act(y + b_ref[k])

    def encoder(h):
        return layer(layer(layer(h, 0, relu), 1, relu), 2, relu)

    def decoder_1(h):
        return layer(layer(layer(h, 3, relu), 4, relu), 5, sigm)

    def decoder_2(h):
        return layer(layer(layer(h, 6, relu), 7, relu), 8, sigm)

    bb = o1_ref.shape[0]
    x = x_ref[...]                       # (bb, P) f32, already lane-padded

    z = encoder(x)
    outs1 = decoder_1(z)
    z2 = encoder(outs1)
    # Fused: one batched decoder_2 pass produces both outs2 and outs2_t
    # (3 matmuls with 2x the M dimension instead of 6 matmuls).
    both = decoder_2(jnp.concatenate([z, z2], axis=0))

    o1_ref[...] = outs1.astype(o1_ref.dtype)
    o2_ref[...] = both[:bb].astype(o2_ref.dtype)
    o2t_ref[...] = both[bb:].astype(o2t_ref.dtype)


@functools.partial(jax.jit, static_argnames=("max_block_b",))
def usad_forward(x, w_slab, b_slab, max_block_b=256):
    """Runs the full USAD forward in one pallas_call.

    x: (B, L) float32; w_slab/b_slab from pack_usad_params.
    Returns (outs1, outs2, outs2_t), each (B, L) float32.
    """
    B, L = x.shape
    P = w_slab.shape[-1]

    # Large batch tiles: fill MXU rows, minimize grid steps (per-step overhead
    # ~0.35us); with B > max_block_b the grid is still >1 so megacore sharding
    # ("parallel") applies.
    B8 = _round_up(B, 8)
    block_b = min(B8, max_block_b)
    B_pad = _round_up(B, block_b)

    xp = x.astype(jnp.float32)
    if B_pad != B or P != L:
        xp = jnp.pad(xp, ((0, B_pad - B), (0, P - L)))

    grid = (B_pad // block_b,)
    x_spec = pl.BlockSpec((block_b, P), lambda i: (i, 0))
    w_spec = pl.BlockSpec(w_slab.shape, lambda i: (0, 0, 0))   # grid-invariant
    b_spec = pl.BlockSpec(b_slab.shape, lambda i: (0, 0, 0))   # grid-invariant
    out_spec = pl.BlockSpec((block_b, P), lambda i: (i, 0))
    out_sds = jax.ShapeDtypeStruct((B_pad, P), jnp.float32)

    o1, o2, o2t = pl.pallas_call(
        usad_kernel,
        out_shape=(out_sds, out_sds, out_sds),
        grid_spec=pltpu.PrefetchScalarGridSpec(
            num_scalar_prefetch=0,
            grid=grid,
            in_specs=[x_spec, w_spec, b_spec],
            out_specs=[out_spec, out_spec, out_spec],
        ),
        compiler_params=pltpu.CompilerParams(
            dimension_semantics=("parallel",)),
    )(xp, w_slab, b_slab)

    return o1[:B, :L], o2[:B, :L], o2t[:B, :L]


def usad_forward_ref(x, params, matmul_dtype=jnp.float32):
    """Plain-JAX reference. matmul_dtype=bf16 mirrors the kernel's numerics."""
    relu = lambda v: jnp.maximum(v, 0.0)
    sigm = jax.nn.sigmoid

    def mlp(h, ps, acts):
        for (w, b), a in zip(ps, acts):
            y = jnp.dot(h.astype(matmul_dtype), w.astype(matmul_dtype),
                        preferred_element_type=jnp.float32) + b
            h = a(y)
        return h

    enc = [(params[0], params[1]), (params[2], params[3]), (params[4], params[5])]
    dec1 = [(params[6], params[7]), (params[8], params[9]), (params[10], params[11])]
    dec2 = [(params[12], params[13]), (params[14], params[15]), (params[16], params[17])]

    z = mlp(x, enc, [relu, relu, relu])
    o1 = mlp(z, dec1, [relu, relu, sigm])
    o2 = mlp(z, dec2, [relu, relu, sigm])
    o2t = mlp(mlp(o1, enc, [relu, relu, relu]), dec2, [relu, relu, sigm])
    return o1, o2, o2t


if __name__ == "__main__":
    INPUT_LENGTH = 128   # number of input features
    HIDDEN_SIZE = 32     # bottleneck size
    BATCH = 16

    key = jax.random.PRNGKey(0)
    k_params, k_x = jax.random.split(key)

    params = init_usad_params(k_params, INPUT_LENGTH, HIDDEN_SIZE)
    x = jax.random.uniform(k_x, (BATCH, INPUT_LENGTH), jnp.float32)

    w_slab, b_slab = pack_usad_params(params, INPUT_LENGTH, HIDDEN_SIZE,
                                      matmul_dtype=jnp.bfloat16)

    outs1, outs2, outs2_t = usad_forward(x, w_slab, b_slab)
    jax.block_until_ready((outs1, outs2, outs2_t))

    # Tight check against a reference with the same bf16-matmul numerics.
    m1, m2, m2t = usad_forward_ref(x, params, matmul_dtype=jnp.bfloat16)
    assert jnp.allclose(outs1, m1, atol=1e-3, rtol=1e-3)
    assert jnp.allclose(outs2, m2, atol=1e-3, rtol=1e-3)
    assert jnp.allclose(outs2_t, m2t, atol=1e-3, rtol=1e-3)

    # Loose check against the exact f32 (PyTorch-semantics) reference.
    r1, r2, r2t = usad_forward_ref(x, params)
    assert jnp.allclose(outs1, r1, atol=3e-2, rtol=3e-2)
    assert jnp.allclose(outs2, r2, atol=3e-2, rtol=3e-2)
    assert jnp.allclose(outs2_t, r2t, atol=3e-2, rtol=3e-2)

    print("KERNEL_OK")
</pallas_src>

<mosaic_0001>
module attributes {stable_mosaic.version = 11 : i64} {
  func.func @usad_kernel(%arg0: i32, %arg1: memref<16x128xf32, #tpu.memory_space<vmem>>, %arg2: memref<9x128x128xbf16, #tpu.memory_space<vmem>>, %arg3: memref<9x1x128xf32, #tpu.memory_space<vmem>>, %arg4: memref<16x128xf32, #tpu.memory_space<vmem>>, %arg5: memref<16x128xf32, #tpu.memory_space<vmem>>, %arg6: memref<16x128xf32, #tpu.memory_space<vmem>>) attributes {dimension_semantics = [#tpu.dimension_semantics<parallel>], iteration_bounds = array<i64: 1>, scalar_prefetch = 0 : i64, scratch_operands = 0 : i64, tpu.core_type = #tpu.core_type<tc>, window_params = [{transform_indices = @transform_0, window_bounds = array<i64: 16, 128>}, {pipeline_mode = #tpu.pipeline_mode<synchronous>, transform_indices = @transform_1, window_bounds = array<i64: 9, 128, 128>}, {pipeline_mode = #tpu.pipeline_mode<synchronous>, transform_indices = @transform_2, window_bounds = array<i64: 9, 1, 128>}, {transform_indices = @transform_3, window_bounds = array<i64: 16, 128>}, {transform_indices = @transform_4, window_bounds = array<i64: 16, 128>}, {transform_indices = @transform_5, window_bounds = array<i64: 16, 128>}]} {
    %c0 = arith.constant 0 : index
    %c0_0 = arith.constant 0 : index
    %0 = vector.load %arg1[%c0, %c0_0] : memref<16x128xf32, #tpu.memory_space<vmem>>, vector<16x128xf32>
    %1 = arith.truncf %0 : vector<16x128xf32> to vector<16x128xbf16>
    %c0_1 = arith.constant 0 : index
    %c0_2 = arith.constant 0 : index
    %c0_3 = arith.constant 0 : index
    %2 = vector.load %arg2[%c0_1, %c0_2, %c0_3] : memref<9x128x128xbf16, #tpu.memory_space<vmem>>, vector<1x128x128xbf16>
    %3 = vector.shape_cast %2 : vector<1x128x128xbf16> to vector<128x128xbf16>
    %cst = arith.constant dense<0.000000e+00> : vector<16x128xf32>
    %4 = tpu.matmul %1, %3, %cst {dimension_numbers = #tpu.dot_dimension_numbers<[1], [0], [0], [1], [0, 0, 1, 1], [], []>} : vector<16x128xbf16>, vector<128x128xbf16>, vector<16x128xf32> -> vector<16x128xf32>
    %c0_4 = arith.constant 0 : index
    %c0_5 = arith.constant 0 : index
    %c0_6 = arith.constant 0 : index
    %5 = vector.load %arg3[%c0_4, %c0_5, %c0_6] : memref<9x1x128xf32, #tpu.memory_space<vmem>>, vector<1x1x128xf32>
    %6 = vector.shape_cast %5 : vector<1x1x128xf32> to vector<1x128xf32>
    %7 = vector.broadcast %6 : vector<1x128xf32> to vector<16x128xf32>
    %8 = arith.addf %4, %7 : vector<16x128xf32>
    %cst_7 = arith.constant 0.000000e+00 : f32
    %9 = vector.broadcast %cst_7 : f32 to vector<16x128xf32>
    %10 = arith.maximumf %8, %9 : vector<16x128xf32>
    %11 = arith.truncf %10 : vector<16x128xf32> to vector<16x128xbf16>
    %c1 = arith.constant 1 : index
    %c0_8 = arith.constant 0 : index
    %c0_9 = arith.constant 0 : index
    %12 = vector.load %arg2[%c1, %c0_8, %c0_9] : memref<9x128x128xbf16, #tpu.memory_space<vmem>>, vector<1x128x128xbf16>
    %13 = vector.shape_cast %12 : vector<1x128x128xbf16> to vector<128x128xbf16>
    %cst_10 = arith.constant dense<0.000000e+00> : vector<16x128xf32>
    %14 = tpu.matmul %11, %13, %cst_10 {dimension_numbers = #tpu.dot_dimension_numbers<[1], [0], [0], [1], [0, 0, 1, 1], [], []>} : vector<16x128xbf16>, vector<128x128xbf16>, vector<16x128xf32> -> vector<16x128xf32>
    %c1_11 = arith.constant 1 : index
    %c0_12 = arith.constant 0 : index
    %c0_13 = arith.constant 0 : index
    %15 = vector.load %arg3[%c1_11, %c0_12, %c0_13] : memref<9x1x128xf32, #tpu.memory_space<vmem>>, vector<1x1x128xf32>
    %16 = vector.shape_cast %15 : vector<1x1x128xf32> to vector<1x128xf32>
    %17 = vector.broadcast %16 : vector<1x128xf32> to vector<16x128xf32>
    %18 = arith.addf %14, %17 : vector<16x128xf32>
    %cst_14 = arith.constant 0.000000e+00 : f32
    %19 = vector.broadcast %cst_14 : f32 to vector<16x128xf32>
    %20 = arith.maximumf %18, %19 : vector<16x128xf32>
    %21 = arith.truncf %20 : vector<16x128xf32> to vector<16x128xbf16>
    %c2 = arith.constant 2 : index
    %c0_15 = arith.constant 0 : index
    %c0_16 = arith.constant 0 : index
    %22 = vector.load %arg2[%c2, %c0_15, %c0_16] : memref<9x128x128xbf16, #tpu.memory_space<vmem>>, vector<1x128x128xbf16>
    %23 = vector.shape_cast %22 : vector<1x128x128xbf16> to vector<128x128xbf16>
    %cst_17 = arith.constant dense<0.000000e+00> : vector<16x128xf32>
    %24 = tpu.matmul %21, %23, %cst_17 {dimension_numbers = #tpu.dot_dimension_numbers<[1], [0], [0], [1], [0, 0, 1, 1], [], []>} : vector<16x128xbf16>, vector<128x128xbf16>, vector<16x128xf32> -> vector<16x128xf32>
    %c2_18 = arith.constant 2 : index
    %c0_19 = arith.constant 0 : index
    %c0_20 = arith.constant 0 : index
    %25 = vector.load %arg3[%c2_18, %c0_19, %c0_20] : memref<9x1x128xf32, #tpu.memory_space<vmem>>, vector<1x1x128xf32>
    %26 = vector.shape_cast %25 : vector<1x1x128xf32> to vector<1x128xf32>
    %27 = vector.broadcast %26 : vector<1x128xf32> to vector<16x128xf32>
    %28 = arith.addf %24, %27 : vector<16x128xf32>
    %cst_21 = arith.constant 0.000000e+00 : f32
    %29 = vector.broadcast %cst_21 : f32 to vector<16x128xf32>
    %30 = arith.maximumf %28, %29 : vector<16x128xf32>
    %31 = arith.truncf %30 : vector<16x128xf32> to vector<16x128xbf16>
    %c3 = arith.constant 3 : index
    %c0_22 = arith.constant 0 : index
    %c0_23 = arith.constant 0 : index
    %32 = vector.load %arg2[%c3, %c0_22, %c0_23] : memref<9x128x128xbf16, #tpu.memory_space<vmem>>, vector<1x128x128xbf16>
    %33 = vector.shape_cast %32 : vector<1x128x128xbf16> to vector<128x128xbf16>
    %cst_24 = arith.constant dense<0.000000e+00> : vector<16x128xf32>
    %34 = tpu.matmul %31, %33, %cst_24 {dimension_numbers = #tpu.dot_dimension_numbers<[1], [0], [0], [1], [0, 0, 1, 1], [], []>} : vector<16x128xbf16>, vector<128x128xbf16>, vector<16x128xf32> -> vector<16x128xf32>
    %c3_25 = arith.constant 3 : index
    %c0_26 = arith.constant 0 : index
    %c0_27 = arith.constant 0 : index
    %35 = vector.load %arg3[%c3_25, %c0_26, %c0_27] : memref<9x1x128xf32, #tpu.memory_space<vmem>>, vector<1x1x128xf32>
    %36 = vector.shape_cast %35 : vector<1x1x128xf32> to vector<1x128xf32>
    %37 = vector.broadcast %36 : vector<1x128xf32> to vector<16x128xf32>
    %38 = arith.addf %34, %37 : vector<16x128xf32>
    %cst_28 = arith.constant 0.000000e+00 : f32
    %39 = vector.broadcast %cst_28 : f32 to vector<16x128xf32>
    %40 = arith.maximumf %38, %39 : vector<16x128xf32>
    %41 = arith.truncf %40 : vector<16x128xf32> to vector<16x128xbf16>
    %c4 = arith.constant 4 : index
    %c0_29 = arith.constant 0 : index
    %c0_30 = arith.constant 0 : index
    %42 = vector.load %arg2[%c4, %c0_29, %c0_30] : memref<9x128x128xbf16, #tpu.memory_space<vmem>>, vector<1x128x128xbf16>
    %43 = vector.shape_cast %42 : vector<1x128x128xbf16> to vector<128x128xbf16>
    %cst_31 = arith.constant dense<0.000000e+00> : vector<16x128xf32>
    %44 = tpu.matmul %41, %43, %cst_31 {dimension_numbers = #tpu.dot_dimension_numbers<[1], [0], [0], [1], [0, 0, 1, 1], [], []>} : vector<16x128xbf16>, vector<128x128xbf16>, vector<16x128xf32> -> vector<16x128xf32>
    %c4_32 = arith.constant 4 : index
    %c0_33 = arith.constant 0 : index
    %c0_34 = arith.constant 0 : index
    %45 = vector.load %arg3[%c4_32, %c0_33, %c0_34] : memref<9x1x128xf32, #tpu.memory_space<vmem>>, vector<1x1x128xf32>
    %46 = vector.shape_cast %45 : vector<1x1x128xf32> to vector<1x128xf32>
    %47 = vector.broadcast %46 : vector<1x128xf32> to vector<16x128xf32>
    %48 = arith.addf %44, %47 : vector<16x128xf32>
    %cst_35 = arith.constant 0.000000e+00 : f32
    %49 = vector.broadcast %cst_35 : f32 to vector<16x128xf32>
    %50 = arith.maximumf %48, %49 : vector<16x128xf32>
    %51 = arith.truncf %50 : vector<16x128xf32> to vector<16x128xbf16>
    %c5 = arith.constant 5 : index
    %c0_36 = arith.constant 0 : index
    %c0_37 = arith.constant 0 : index
    %52 = vector.load %arg2[%c5, %c0_36, %c0_37] : memref<9x128x128xbf16, #tpu.memory_space<vmem>>, vector<1x128x128xbf16>
    %53 = vector.shape_cast %52 : vector<1x128x128xbf16> to vector<128x128xbf16>
    %cst_38 = arith.constant dense<0.000000e+00> : vector<16x128xf32>
    %54 = tpu.matmul %51, %53, %cst_38 {dimension_numbers = #tpu.dot_dimension_numbers<[1], [0], [0], [1], [0, 0, 1, 1], [], []>} : vector<16x128xbf16>, vector<128x128xbf16>, vector<16x128xf32> -> vector<16x128xf32>
    %c5_39 = arith.constant 5 : index
    %c0_40 = arith.constant 0 : index
    %c0_41 = arith.constant 0 : index
    %55 = vector.load %arg3[%c5_39, %c0_40, %c0_41] : memref<9x1x128xf32, #tpu.memory_space<vmem>>, vector<1x1x128xf32>
    %56 = vector.shape_cast %55 : vector<1x1x128xf32> to vector<1x128xf32>
    %57 = vector.broadcast %56 : vector<1x128xf32> to vector<16x128xf32>
    %58 = arith.addf %54, %57 : vector<16x128xf32>
    %59 = arith.negf %58 : vector<16x128xf32>
    %60 = math.exp %59 : vector<16x128xf32>
    %cst_42 = arith.constant 1.000000e+00 : f32
    %61 = vector.broadcast %cst_42 : f32 to vector<16x128xf32>
    %62 = arith.addf %61, %60 : vector<16x128xf32>
    %63 = arith.divf %61, %62 : vector<16x128xf32>
    %64 = arith.truncf %63 : vector<16x128xf32> to vector<16x128xbf16>
    %c0_43 = arith.constant 0 : index
    %c0_44 = arith.constant 0 : index
    %c0_45 = arith.constant 0 : index
    %65 = vector.load %arg2[%c0_43, %c0_44, %c0_45] : memref<9x128x128xbf16, #tpu.memory_space<vmem>>, vector<1x128x128xbf16>
    %66 = vector.shape_cast %65 : vector<1x128x128xbf16> to vector<128x128xbf16>
    %cst_46 = arith.constant dense<0.000000e+00> : vector<16x128xf32>
    %67 = tpu.matmul %64, %66, %cst_46 {dimension_numbers = #tpu.dot_dimension_numbers<[1], [0], [0], [1], [0, 0, 1, 1], [], []>} : vector<16x128xbf16>, vector<128x128xbf16>, vector<16x128xf32> -> vector<16x128xf32>
    %c0_47 = arith.constant 0 : index
    %c0_48 = arith.constant 0 : index
    %c0_49 = arith.constant 0 : index
    %68 = vector.load %arg3[%c0_47, %c0_48, %c0_49] : memref<9x1x128xf32, #tpu.memory_space<vmem>>, vector<1x1x128xf32>
    %69 = vector.shape_cast %68 : vector<1x1x128xf32> to vector<1x128xf32>
    %70 = vector.broadcast %69 : vector<1x128xf32> to vector<16x128xf32>
    %71 = arith.addf %67, %70 : vector<16x128xf32>
    %cst_50 = arith.constant 0.000000e+00 : f32
    %72 = vector.broadcast %cst_50 : f32 to vector<16x128xf32>
    %73 = arith.maximumf %71, %72 : vector<16x128xf32>
    %74 = arith.truncf %73 : vector<16x128xf32> to vector<16x128xbf16>
    %c1_51 = arith.constant 1 : index
    %c0_52 = arith.constant 0 : index
    %c0_53 = arith.constant 0 : index
    %75 = vector.load %arg2[%c1_51, %c0_52, %c0_53] : memref<9x128x128xbf16, #tpu.memory_space<vmem>>, vector<1x128x128xbf16>
    %76 = vector.shape_cast %75 : vector<1x128x128xbf16> to vector<128x128xbf16>
    %cst_54 = arith.constant dense<0.000000e+00> : vector<16x128xf32>
    %77 = tpu.matmul %74, %76, %cst_54 {dimension_numbers = #tpu.dot_dimension_numbers<[1], [0], [0], [1], [0, 0, 1, 1], [], []>} : vector<16x128xbf16>, vector<128x128xbf16>, vector<16x128xf32> -> vector<16x128xf32>
    %c1_55 = arith.constant 1 : index
    %c0_56 = arith.constant 0 : index
    %c0_57 = arith.constant 0 : index
    %78 = vector.load %arg3[%c1_55, %c0_56, %c0_57] : memref<9x1x128xf32, #tpu.memory_space<vmem>>, vector<1x1x128xf32>
    %79 = vector.shape_cast %78 : vector<1x1x128xf32> to vector<1x128xf32>
    %80 = vector.broadcast %79 : vector<1x128xf32> to vector<16x128xf32>
    %81 = arith.addf %77, %80 : vector<16x128xf32>
    %cst_58 = arith.constant 0.000000e+00 : f32
    %82 = vector.broadcast %cst_58 : f32 to vector<16x128xf32>
    %83 = arith.maximumf %81, %82 : vector<16x128xf32>
    %84 = arith.truncf %83 : vector<16x128xf32> to vector<16x128xbf16>
    %c2_59 = arith.constant 2 : index
    %c0_60 = arith.constant 0 : index
    %c0_61 = arith.constant 0 : index
    %85 = vector.load %arg2[%c2_59, %c0_60, %c0_61] : memref<9x128x128xbf16, #tpu.memory_space<vmem>>, vector<1x128x128xbf16>
    %86 = vector.shape_cast %85 : vector<1x128x128xbf16> to vector<128x128xbf16>
    %cst_62 = arith.constant dense<0.000000e+00> : vector<16x128xf32>
    %87 = tpu.matmul %84, %86, %cst_62 {dimension_numbers = #tpu.dot_dimension_numbers<[1], [0], [0], [1], [0, 0, 1, 1], [], []>} : vector<16x128xbf16>, vector<128x128xbf16>, vector<16x128xf32> -> vector<16x128xf32>
    %c2_63 = arith.constant 2 : index
    %c0_64 = arith.constant 0 : index
    %c0_65 = arith.constant 0 : index
    %88 = vector.load %arg3[%c2_63, %c0_64, %c0_65] : memref<9x1x128xf32, #tpu.memory_space<vmem>>, vector<1x1x128xf32>
    %89 = vector.shape_cast %88 : vector<1x1x128xf32> to vector<1x128xf32>
    %90 = vector.broadcast %89 : vector<1x128xf32> to vector<16x128xf32>
    %91 = arith.addf %87, %90 : vector<16x128xf32>
    %cst_66 = arith.constant 0.000000e+00 : f32
    %92 = vector.broadcast %cst_66 : f32 to vector<16x128xf32>
    %93 = arith.maximumf %91, %92 : vector<16x128xf32>
    %94 = tpu.concatenate %30, %93 in 0 : vector<16x128xf32>, vector<16x128xf32> -> vector<32x128xf32>
    %95 = arith.truncf %94 : vector<32x128xf32> to vector<32x128xbf16>
    %c6 = arith.constant 6 : index
    %c0_67 = arith.constant 0 : index
    %c0_68 = arith.constant 0 : index
    %96 = vector.load %arg2[%c6, %c0_67, %c0_68] : memref<9x128x128xbf16, #tpu.memory_space<vmem>>, vector<1x128x128xbf16>
    %97 = vector.shape_cast %96 : vector<1x128x128xbf16> to vector<128x128xbf16>
    %cst_69 = arith.constant dense<0.000000e+00> : vector<32x128xf32>
    %98 = tpu.matmul %95, %97, %cst_69 {dimension_numbers = #tpu.dot_dimension_numbers<[1], [0], [0], [1], [0, 0, 1, 1], [], []>} : vector<32x128xbf16>, vector<128x128xbf16>, vector<32x128xf32> -> vector<32x128xf32>
    %c6_70 = arith.constant 6 : index
    %c0_71 = arith.constant 0 : index
    %c0_72 = arith.constant 0 : index
    %99 = vector.load %arg3[%c6_70, %c0_71, %c0_72] : memref<9x1x128xf32, #tpu.memory_space<vmem>>, vector<1x1x128xf32>
    %100 = vector.shape_cast %99 : vector<1x1x128xf32> to vector<1x128xf32>
    %101 = vector.broadcast %100 : vector<1x128xf32> to vector<32x128xf32>
    %102 = arith.addf %98, %101 : vector<32x128xf32>
    %cst_73 = arith.constant 0.000000e+00 : f32
    %103 = vector.broadcast %cst_73 : f32 to vector<32x128xf32>
    %104 = arith.maximumf %102, %103 : vector<32x128xf32>
    %105 = arith.truncf %104 : vector<32x128xf32> to vector<32x128xbf16>
    %c7 = arith.constant 7 : index
    %c0_74 = arith.constant 0 : index
    %c0_75 = arith.constant 0 : index
    %106 = vector.load %arg2[%c7, %c0_74, %c0_75] : memref<9x128x128xbf16, #tpu.memory_space<vmem>>, vector<1x128x128xbf16>
    %107 = vector.shape_cast %106 : vector<1x128x128xbf16> to vector<128x128xbf16>
    %cst_76 = arith.constant dense<0.000000e+00> : vector<32x128xf32>
    %108 = tpu.matmul %105, %107, %cst_76 {dimension_numbers = #tpu.dot_dimension_numbers<[1], [0], [0], [1], [0, 0, 1, 1], [], []>} : vector<32x128xbf16>, vector<128x128xbf16>, vector<32x128xf32> -> vector<32x128xf32>
    %c7_77 = arith.constant 7 : index
    %c0_78 = arith.constant 0 : index
    %c0_79 = arith.constant 0 : index
    %109 = vector.load %arg3[%c7_77, %c0_78, %c0_79] : memref<9x1x128xf32, #tpu.memory_space<vmem>>, vector<1x1x128xf32>
    %110 = vector.shape_cast %109 : vector<1x1x128xf32> to vector<1x128xf32>
    %111 = vector.broadcast %110 : vector<1x128xf32> to vector<32x128xf32>
    %112 = arith.addf %108, %111 : vector<32x128xf32>
    %cst_80 = arith.constant 0.000000e+00 : f32
    %113 = vector.broadcast %cst_80 : f32 to vector<32x128xf32>
    %114 = arith.maximumf %112, %113 : vector<32x128xf32>
    %115 = arith.truncf %114 : vector<32x128xf32> to vector<32x128xbf16>
    %c8 = arith.constant 8 : index
    %c0_81 = arith.constant 0 : index
    %c0_82 = arith.constant 0 : index
    %116 = vector.load %arg2[%c8, %c0_81, %c0_82] : memref<9x128x128xbf16, #tpu.memory_space<vmem>>, vector<1x128x128xbf16>
    %117 = vector.shape_cast %116 : vector<1x128x128xbf16> to vector<128x128xbf16>
    %cst_83 = arith.constant dense<0.000000e+00> : vector<32x128xf32>
    %118 = tpu.matmul %115, %117, %cst_83 {dimension_numbers = #tpu.dot_dimension_numbers<[1], [0], [0], [1], [0, 0, 1, 1], [], []>} : vector<32x128xbf16>, vector<128x128xbf16>, vector<32x128xf32> -> vector<32x128xf32>
    %c8_84 = arith.constant 8 : index
    %c0_85 = arith.constant 0 : index
    %c0_86 = arith.constant 0 : index
    %119 = vector.load %arg3[%c8_84, %c0_85, %c0_86] : memref<9x1x128xf32, #tpu.memory_space<vmem>>, vector<1x1x128xf32>
    %120 = vector.shape_cast %119 : vector<1x1x128xf32> to vector<1x128xf32>
    %121 = vector.broadcast %120 : vector<1x128xf32> to vector<32x128xf32>
    %122 = arith.addf %118, %121 : vector<32x128xf32>
    %123 = arith.negf %122 : vector<32x128xf32>
    %124 = math.exp %123 : vector<32x128xf32>
    %cst_87 = arith.constant 1.000000e+00 : f32
    %125 = vector.broadcast %cst_87 : f32 to vector<32x128xf32>
    %126 = arith.addf %125, %124 : vector<32x128xf32>
    %127 = arith.divf %125, %126 : vector<32x128xf32>
    %c0_88 = arith.constant 0 : index
    %c0_89 = arith.constant 0 : index
    %128 = vector.load %arg4[%c0_88, %c0_89] : memref<16x128xf32, #tpu.memory_space<vmem>>, vector<16x128xf32>
    tpu.vector_store %arg4[%c0_88, %c0_89], %63 {strides = array<i32>} : memref<16x128xf32, #tpu.memory_space<vmem>>, vector<16x128xf32>,
    %129 = vector.extract_strided_slice %127 {offsets = [0, 0], sizes = [16, 128], strides = [1, 1]} : vector<32x128xf32> to vector<16x128xf32>
    %c0_90 = arith.constant 0 : index
    %c0_91 = arith.constant 0 : index
    %130 = vector.load %arg5[%c0_90, %c0_91] : memref<16x128xf32, #tpu.memory_space<vmem>>, vector<16x128xf32>
    tpu.vector_store %arg5[%c0_90, %c0_91], %129 {strides = array<i32>} : memref<16x128xf32, #tpu.memory_space<vmem>>, vector<16x128xf32>,
    %131 = vector.extract_strided_slice %127 {offsets = [16, 0], sizes = [16, 128], strides = [1, 1]} : vector<32x128xf32> to vector<16x128xf32>
    %c0_92 = arith.constant 0 : index
    %c0_93 = arith.constant 0 : index
    %132 = vector.load %arg6[%c0_92, %c0_93] : memref<16x128xf32, #tpu.memory_space<vmem>>, vector<16x128xf32>
    tpu.vector_store %arg6[%c0_92, %c0_93], %131 {strides = array<i32>} : memref<16x128xf32, #tpu.memory_space<vmem>>, vector<16x128xf32>,
    return
  }
  func.func @transform_0(%arg0: i32) -> (i32, i32) {
    %c0_i32 = arith.constant 0 : i32
    %c0_i32_0 = arith.constant 0 : i32
    return %arg0, %c0_i32 : i32, i32
  }
  func.func @transform_1(%arg0: i32) -> (i32, i32, i32) {
    %c0_i32 = arith.constant 0 : i32
    %c0_i32_0 = arith.constant 0 : i32
    %c0_i32_1 = arith.constant 0 : i32
    %c0_i32_2 = arith.constant 0 : i32
    return %c0_i32, %c0_i32_0, %c0_i32_1 : i32, i32, i32
  }
  func.func @transform_2(%arg0: i32) -> (i32, i32, i32) {
    %c0_i32 = arith.constant 0 : i32
    %c0_i32_0 = arith.constant 0 : i32
    %c0_i32_1 = arith.constant 0 : i32
    %c0_i32_2 = arith.constant 0 : i32
    return %c0_i32, %c0_i32_0, %c0_i32_1 : i32, i32, i32
  }
  func.func @transform_3(%arg0: i32) -> (i32, i32) {
    %c0_i32 = arith.constant 0 : i32
    %c0_i32_0 = arith.constant 0 : i32
    return %arg0, %c0_i32 : i32, i32
  }
  func.func @transform_4(%arg0: i32) -> (i32, i32) {
    %c0_i32 = arith.constant 0 : i32
    %c0_i32_0 = arith.constant 0 : i32
    return %arg0, %c0_i32 : i32, i32
  }
  func.func @transform_5(%arg0: i32) -> (i32, i32) {
    %c0_i32 = arith.constant 0 : i32
    %c0_i32_0 = arith.constant 0 : i32
    return %arg0, %c0_i32 : i32, i32
  }
}

</mosaic_0001>

<bundles_post_ra>
// kernel: usad_forward.1
= control target key start
LH: loop header
LB: loop body
LE: loop exit
PB: predicated region body
PF: predicated region fallthrough
CT: control target
= control target key end

     0   :  { %11 = vsyncpa [#allocation3], 0  ;;  %s2321_s0 = inlined_call_operand.hbm [shape: f32[16,128], index: 0, kind: input, shape index: {}]   ;;  %s2322_s1 = inlined_call_operand.hbm [shape: bf16[9,128,128], index: 1, kind: input, shape index: {}]   ;;  %s2323_s2 = inlined_call_operand.hbm [shape: f32[9,1,128], index: 2, kind: input, shape index: {}]   ;;  %s2324_s3 = inlined_call_operand.hbm [shape: f32[16,128], index: 3, kind: output, shape index: {0}]   ;;  %s2325_s4 = inlined_call_operand.hbm [shape: f32[16,128], index: 4, kind: output, shape index: {1}]   ;;  %s2326_s5 = inlined_call_operand.hbm [shape: f32[16,128], index: 5, kind: output, shape index: {2}]  }
   0x1   :  { %12 = vsyncpa [#allocation6], 0 }
   0x2   :  { %13 = vsyncpa [#allocation4], 0 }
   0x3   :  { %14 = vsyncpa [#allocation10], 0  ;;  %s2039_s18 = smov [#allocation5]  }
   0x4   :  { %s32_s19 = sshll.u32 %s2039_s18, 4  ;;  %s33_s19 = int_to_ptr.vmem [resolvable:$true] %s32_s19 }
   0x5   :  { %s1919_s20 = scalar_lea.vmem %s33_s19, 9216  ;;  %p1924_p1 = scmp.lt.s32.totalorder %s33_s19, %s33_s19 }
   0x6   :  { %p1920_p0 = scmp.ne.s32.totalorder %s33_s19, %s1919_s20  ;;  %p1925_p2 = scmp.lt.s32.totalorder %s1919_s20, %s1919_s20 }
   0x8   :  { %p1926_p3 = por %p1925_p2, %p1924_p1 }
   0xa   :  { %p1927_p4 = pnand %p1926_p3, %p1920_p0 }
   0xc   :  { %1930 = shalt.err (!%p1927_p4)
}
   0xd   :  { %s2040_s21 = smov 64   ;;  %s2041_s22 = smov 4  }
   0xe   :  { %38 = dma.hbm_to_vmem [thread:$0]  %s2322_s1, 9216, %s33_s19, [#allocation6], %s2040_s21, %s2040_s21, %s2041_s22  }
   0xf   :  { %s2042_s25 = smov [#allocation2]  }
  0x10   :  { %s20_s26 = sshll.u32 %s2042_s25, 4  ;;  %s21_s26 = int_to_ptr.vmem [resolvable:$true] %s20_s26 }
  0x11   :  { %s1939_s27 = scalar_lea.vmem %s21_s26, 256  ;;  %p1944_p6 = scmp.lt.s32.totalorder %s21_s26, %s21_s26 }
  0x12   :  { %p1940_p5 = scmp.ne.s32.totalorder %s21_s26, %s1939_s27  ;;  %p1945_p7 = scmp.lt.s32.totalorder %s1939_s27, %s1939_s27 }
  0x14   :  { %p1946_p8 = por %p1945_p7, %p1944_p6 }
  0x16   :  { %p1947_p9 = pnand %p1946_p8, %p1940_p5 }
  0x18   :  { %1950 = shalt.err (!%p1947_p9)
}
  0x19   :  { %s2043_s28 = smov 128   ;;  %s2044_s29 = smov 8  }
  0x1a   :  { %26 = dma.hbm_to_vmem [thread:$0]  %s2321_s0, 256, %s21_s26, [#allocation3], %s2043_s28, %s2043_s28, %s2044_s29  }
  0x1b   :  { %s2045_s1 = smov [#allocation7]  }
  0x1c   :  { %s44_s7 = sshll.u32 %s2045_s1, 4  ;;  %s45_s7 = int_to_ptr.vmem [resolvable:$true] %s44_s7 }
  0x1d   :  { %s1959_s8 = scalar_lea.vmem %s45_s7, 144  ;;  %s1963_s9 = scalar_lea.vmem %s45_s7, 160 }
  0x1e   :  { %p1960_p10 = scmp.ne.s32.totalorder %s45_s7, %s1959_s8  ;;  %p1964_p11 = scmp.lt.s32.totalorder %s45_s7, %s45_s7 }
  0x1f   :  { %p1965_p12 = scmp.lt.s32.totalorder %s1963_s9, %s1959_s8 }
  0x21   :  { %p1966_p13 = por %p1965_p12, %p1964_p11 }
  0x23   :  { %p1967_p0 = pnand %p1966_p13, %p1960_p10 }
  0x25   :  { %1970 = shalt.err (!%p1967_p0)
}
  0x26   :  { %s2046_s10 = smov 16   ;;  %s2047_s11 = smov 1  }
  0x27   :  { %50 = dma.hbm_to_vmem [thread:$0]  %s2323_s2, 144, %s45_s7, [#allocation6], %s2046_s10, %s2046_s10, %s2047_s11  }
  0x28   :  { %2031 = dma.done.wait [#allocation3], 256  }
  0x29   :  { %2032 = vsyncadd [#allocation3], 4294967040 }
  0x2a   :  { %2033 = dma.done.wait [#allocation6], 9360  }
  0x2b   :  { %2034 = vsyncadd [#allocation6], 4294957936  ;;  %v2048_v0 = vmov 0.0   ;;  %vm2049_vm0 = vmmov 0   ;;  %v2101_v1 = vld [vmem:[#allocation5 + $0x38] sm:$0xff]   ;;  %v2104_v2 = vld [vmem:[#allocation5 + $0x30] sm:$0xff]  }
  0x2c   :  { %1561 = vmatprep.subr.bf16.mxu0 %v2048_v0  ;;  %1577 = vmatprep.mubr.msk.bf16.mxu0 %vm2049_vm0, %v2048_v0  ;;  %v2108_v3 = vld [vmem:[#allocation5 + $0x28] sm:$0xff]   ;;  %v2111_v4 = vld [vmem:[#allocation5 + $0x78] sm:$0xff]   ;;  %v2114_v5 = vld [vmem:[#allocation5 + $0x20] sm:$0xff]   ;;  %s2050_s0 = smov [#allocation8]  }
  0x2d   :  { %1581 = vmatprep.subr.bf16.mxu1 %v2048_v0  ;;  %1597 = vmatprep.mubr.msk.bf16.mxu1 %vm2049_vm0, %v2048_v0  ;;  %v2118_v6 = vld [vmem:[#allocation5 + $0x70] sm:$0xff]   ;;  %v2121_v7 = vld [vmem:[#allocation5 + $0x18] sm:$0xff]   ;;  %v2123_v8 = vld [vmem:[#allocation5 + $0x68] sm:$0xff]   ;;  %s1319_s2 = sshll.u32 %s2050_s0, 4  ;;  %s1320_s2 = int_to_ptr.vmem [resolvable:$true] %s1319_s2 }
  0x2e   :  { %1562 = vmatpush3.bf16.msra.mxu0 %v2101_v1  ;;  %1582 = vmatpush3.bf16.msra.mxu1 %v2111_v4  ;;  %v2128_v9 = vld [vmem:[#allocation5 + $0x10] sm:$0xff]   ;;  %v2131_v10 = vld [vmem:[#allocation5 + $0x60] sm:$0xff]   ;;  %v2136_v11 = vld [vmem:[#allocation5 + $0x8] sm:$0xff]   ;;  %s1971_s14 = scalar_lea.vmem %s1320_s2, 256  ;;  %p1976_p2 = scmp.lt.s32.totalorder %s1320_s2, %s1320_s2 }
  0x2f   :  { %1563 = vmatprep.subr.bf16.mxu0 %v2048_v0  ;;  %1583 = vmatprep.subr.bf16.mxu1 %v2048_v0  ;;  %v2139_v12 = vld [vmem:[#allocation5 + $0x58] sm:$0xff]   ;;  %v2144_v13 = vld [vmem:[#allocation5] sm:$0xff]   ;;  %v61_v14 = vld [vmem:[#allocation2] sm:$0xff]  ;;  %p1972_p1 = scmp.ne.s32.totalorder %s1320_s2, %s1971_s14  ;;  %p1977_p3 = scmp.lt.s32.totalorder %s1971_s14, %s1971_s14 }
  0x30   :  { %v62_v15 = vld [vmem:[#allocation2 + $0x8] sm:$0xff]  ;;  %v2155_v17 = vld [vmem:[#allocation5 + $0x50] sm:$0xff]   ;;  %v2159_v18 = vld [vmem:[#allocation5 + $0x48] sm:$0xff]  }
  0x31   :  { %v63_v16 = vpack.c.bf16 %v62_v15, %v61_v14  ;;  %v2163_v19 = vld [vmem:[#allocation5 + $0x40] sm:$0xff]   ;;  %v2167_v20 = vld [vmem:[#allocation5 + $0xb8] sm:$0xff]   ;;  %v2170_v21 = vld [vmem:[#allocation5 + $0xb0] sm:$0xff]   ;;  %p1978_p4 = por %p1977_p3, %p1976_p2 }
  0x32   :  { %1564 = vmatpush3.bf16.msra.mxu0 %v2104_v2  ;;  %1584 = vmatpush3.bf16.msra.mxu1 %v2118_v6  ;;  %v2174_v22 = vld [vmem:[#allocation5 + $0xa8] sm:$0xff]   ;;  %v2178_v23 = vld [vmem:[#allocation5 + $0xa0] sm:$0xff]   ;;  %v2182_v24 = vld [vmem:[#allocation5 + $0x98] sm:$0xff]  }
  0x33   :  { %1565 = vmatprep.subr.bf16.mxu0 %v2048_v0  ;;  %1585 = vmatprep.subr.bf16.mxu1 %v2048_v0  ;;  %v2187_v25 = vld [vmem:[#allocation7] ss:$0 sm:$0xff]  ;;  %v2193_v35 = vld [vmem:[#allocation5 + $0x90] sm:$0xff]   ;;  %v2197_v36 = vld [vmem:[#allocation5 + $0x88] sm:$0xff]   ;;  %p1979_p5 = pnand %p1978_p4, %p1972_p1 }
  0x34   :  { %v2201_v37 = vld [vmem:[#allocation5 + $0x80] sm:$0xff]   ;;  %v1839_v38 = vld [vmem:[#allocation5 + $0xf8] sm:$0xff]   ;;  %v1840_v39 = vld [vmem:[#allocation5 + $0xf0] sm:$0xff]  }
  0x35   :  { %v1841_v40 = vld [vmem:[#allocation5 + $0xe8] sm:$0xff]   ;;  %v1842_v41 = vld [vmem:[#allocation5 + $0xe0] sm:$0xff]   ;;  %v1843_v42 = vld [vmem:[#allocation5 + $0xd8] sm:$0xff]  }
  0x36   :  { %1566 = vmatpush3.bf16.msra.mxu0 %v2108_v3  ;;  %1586 = vmatpush3.bf16.msra.mxu1 %v2123_v8  ;;  %v2210_v43 = vld [vmem:[#allocation7 + $0x1] ss:$0 sm:$0xff]  ;;  %v1844_v53 = vld [vmem:[#allocation5 + $0xd0] sm:$0xff]   ;;  %v1845_v54 = vld [vmem:[#allocation5 + $0xc8] sm:$0xff]  }
  0x37   :  { %1567 = vmatprep.subr.bf16.mxu0 %v2048_v0  ;;  %1587 = vmatprep.subr.bf16.mxu1 %v2048_v0  ;;  %v1846_v55 = vld [vmem:[#allocation5 + $0xc0] sm:$0xff]   ;;  %v1847_v56 = vld [vmem:[#allocation5 + $0x138] sm:$0xff]   ;;  %v1848_v57 = vld [vmem:[#allocation5 + $0x130] sm:$0xff]  }
  0x38   :  { %v1849_v58 = vld [vmem:[#allocation5 + $0x128] sm:$0xff]   ;;  %v1850_v59 = vld [vmem:[#allocation5 + $0x120] sm:$0xff]   ;;  %v1851_v60 = vld [vmem:[#allocation5 + $0x118] sm:$0xff]  }
  0x39   :  { %v2224_v61 = vld [vmem:[#allocation7 + $0x2] ss:$0 sm:$0xff] }
  0x3a   :  { %1568 = vmatpush3.bf16.msra.mxu0 %v2114_v5  ;;  %1588 = vmatpush3.bf16.msra.mxu1 %v2131_v10 }
  0x3b   :  { %1569 = vmatprep.subr.bf16.mxu0 %v2048_v0  ;;  %1589 = vmatprep.subr.bf16.mxu1 %v2048_v0 }
  0x3e   :  { %1570 = vmatpush3.bf16.msra.mxu0 %v2121_v7  ;;  %1590 = vmatpush3.bf16.msra.mxu1 %v2139_v12 }
  0x3f   :  { %1571 = vmatprep.subr.bf16.mxu0 %v2048_v0  ;;  %1591 = vmatprep.subr.bf16.mxu1 %v2048_v0 }
  0x42   :  { %1572 = vmatpush3.bf16.msra.mxu0 %v2128_v9  ;;  %1592 = vmatpush3.bf16.msra.mxu1 %v2155_v17 }
  0x43   :  { %1573 = vmatprep.subr.bf16.mxu0 %v2048_v0  ;;  %1593 = vmatprep.subr.bf16.mxu1 %v2048_v0 }
  0x46   :  { %1574 = vmatpush3.bf16.msra.mxu0 %v2136_v11  ;;  %1594 = vmatpush3.bf16.msra.mxu1 %v2159_v18 }
  0x47   :  { %1575 = vmatprep.subr.bf16.mxu0 %v2048_v0  ;;  %1595 = vmatprep.subr.bf16.mxu1 %v2048_v0 }
  0x4a   :  { %1576 = vmatpush3.bf16.msra.mxu0 %v2144_v13  ;;  %1596 = vmatpush3.bf16.msra.mxu1 %v2163_v19 }
  0x4b   :  { %1601 = vmatprep.subr.bf16.mxu0 %v2048_v0  ;;  %1621 = vmatprep.subr.bf16.mxu1 %v2048_v0 }
  0x4d   :  { %1578 = vmatmul.mubr.bf16.vlgmr.msra.gmra.mxu0 %v63_v16 }
  0x4e   :  { %1617 = vmatprep.mubr.msk.bf16.mxu0 %vm2049_vm0, %v2048_v0  ;;  %1602 = vmatpush3.bf16.msra.mxu0 %v2167_v20 }
  0x4f   :  { %1603 = vmatprep.subr.bf16.mxu0 %v2048_v0 }
  0x52   :  { %1604 = vmatpush3.bf16.msra.mxu0 %v2170_v21 }
  0x53   :  { %1605 = vmatprep.subr.bf16.mxu0 %v2048_v0 }
  0x56   :  { %1606 = vmatpush3.bf16.msra.mxu0 %v2174_v22 }
  0x57   :  { %1607 = vmatprep.subr.bf16.mxu0 %v2048_v0 }
  0x5a   :  { %1608 = vmatpush3.bf16.msra.mxu0 %v2178_v23 }
  0x5b   :  { %1609 = vmatprep.subr.bf16.mxu0 %v2048_v0 }
  0x5e   :  { %1610 = vmatpush3.bf16.msra.mxu0 %v2182_v24 }
  0x5f   :  { %1611 = vmatprep.subr.bf16.mxu0 %v2048_v0 }
  0x62   :  { %1612 = vmatpush3.bf16.msra.mxu0 %v2193_v35 }
  0x63   :  { %1613 = vmatprep.subr.bf16.mxu0 %v2048_v0 }
  0x66   :  { %1614 = vmatpush3.bf16.msra.mxu0 %v2197_v36 }
  0x67   :  { %1615 = vmatprep.subr.bf16.mxu0 %v2048_v0 }
  0x6a   :  { %1616 = vmatpush3.bf16.msra.mxu0 %v2201_v37 }
  0x6b   :  { %1641 = vmatprep.subr.bf16.mxu0 %v2048_v0 }
 0x10d   :  { %v169_v26 = vpop.f32.mrf.mxu0 }
 0x10e   :  { %v170_v28 = vadd.f32 %v2187_v25, %v169_v26 }
 0x10f   :  { %v1579_v27 = vpop.f32.mrf.mxu0 }
 0x110   :  { %v176_v32 = vmax.f32 %v170_v28, 0.0 }
 0x111   :  { %v172_v29 = vpop.f32.mrf.mxu0 }
 0x112   :  { %v173_v30 = vadd.f32 %v2187_v25, %v172_v29 }
 0x113   :  { %v1580_v31 = vpop.f32.mrf.mxu0 }
 0x114   :  { %v177_v33 = vmax.f32 %v173_v30, 0.0  ;;  %v1852_v30 = vld [vmem:[#allocation5 + $0x110] sm:$0xff]   ;;  %v1853_v31 = vld [vmem:[#allocation5 + $0x108] sm:$0xff]  }
 0x116   :  { %v178_v34 = vpack.c.bf16 %v177_v33, %v176_v32  ;;  %v1854_v32 = vld [vmem:[#allocation5 + $0x100] sm:$0xff]   ;;  %v1855_v33 = vld [vmem:[#allocation5 + $0x178] sm:$0xff]  }
 0x118   :  { %1598 = vmatmul.mubr.bf16.vlgmr.msra.gmra.mxu1 %v178_v34  ;;  %v1856_v34 = vld [vmem:[#allocation5 + $0x170] sm:$0xff]  }
 0x119   :  { %1637 = vmatprep.mubr.msk.bf16.mxu1 %vm2049_vm0, %v2048_v0  ;;  %1622 = vmatpush3.bf16.msra.mxu1 %v1839_v38  ;;  %v1857_v38 = vld [vmem:[#allocation5 + $0x168] sm:$0xff]  }
 0x11a   :  { %1623 = vmatprep.subr.bf16.mxu1 %v2048_v0 }
 0x11d   :  { %1624 = vmatpush3.bf16.msra.mxu1 %v1840_v39  ;;  %v1858_v39 = vld [vmem:[#allocation5 + $0x160] sm:$0xff]  }
 0x11e   :  { %1625 = vmatprep.subr.bf16.mxu1 %v2048_v0 }
 0x121   :  { %1626 = vmatpush3.bf16.msra.mxu1 %v1841_v40  ;;  %v1859_v40 = vld [vmem:[#allocation5 + $0x158] sm:$0xff]  }
 0x122   :  { %1627 = vmatprep.subr.bf16.mxu1 %v2048_v0 }
 0x125   :  { %1628 = vmatpush3.bf16.msra.mxu1 %v1842_v41  ;;  %v1390_v41 = vld [vmem:[#allocation7 + $0x3] ss:$0 sm:$0xff] }
 0x126   :  { %1629 = vmatprep.subr.bf16.mxu1 %v2048_v0 }
 0x129   :  { %1630 = vmatpush3.bf16.msra.mxu1 %v1843_v42 }
 0x12a   :  { %1631 = vmatprep.subr.bf16.mxu1 %v2048_v0 }
 0x12d   :  { %1632 = vmatpush3.bf16.msra.mxu1 %v1844_v53 }
 0x12e   :  { %1633 = vmatprep.subr.bf16.mxu1 %v2048_v0 }
 0x131   :  { %1634 = vmatpush3.bf16.msra.mxu1 %v1845_v54 }
 0x132   :  { %1635 = vmatprep.subr.bf16.mxu1 %v2048_v0 }
 0x135   :  { %1636 = vmatpush3.bf16.msra.mxu1 %v1846_v55 }
 0x136   :  { %1661 = vmatprep.subr.bf16.mxu1 %v2048_v0 }
 0x1d8   :  { %v286_v44 = vpop.f32.mrf.mxu1 }
 0x1d9   :  { %v287_v46 = vadd.f32 %v2210_v43, %v286_v44 }
 0x1da   :  { %v1599_v45 = vpop.f32.mrf.mxu1 }
 0x1db   :  { %v293_v50 = vmax.f32 %v287_v46, 0.0 }
 0x1dc   :  { %v289_v47 = vpop.f32.mrf.mxu1 }
 0x1dd   :  { %v290_v48 = vadd.f32 %v2210_v43, %v289_v47 }
 0x1de   :  { %v1600_v49 = vpop.f32.mrf.mxu1 }
 0x1df   :  { %v294_v51 = vmax.f32 %v290_v48, 0.0 }
 0x1e1   :  { %v295_v52 = vpack.c.bf16 %v294_v51, %v293_v50 }
 0x1e3   :  { %1618 = vmatmul.mubr.bf16.vlgmr.msra.gmra.mxu0 %v295_v52 }
 0x1e4   :  { %1657 = vmatprep.mubr.msk.bf16.mxu0 %vm2049_vm0, %v2048_v0  ;;  %1642 = vmatpush3.bf16.msra.mxu0 %v1847_v56 }
 0x1e5   :  { %1643 = vmatprep.subr.bf16.mxu0 %v2048_v0 }
 0x1e8   :  { %1644 = vmatpush3.bf16.msra.mxu0 %v1848_v57 }
 0x1e9   :  { %1645 = vmatprep.subr.bf16.mxu0 %v2048_v0 }
 0x1ec   :  { %1646 = vmatpush3.bf16.msra.mxu0 %v1849_v58 }
 0x1ed   :  { %1647 = vmatprep.subr.bf16.mxu0 %v2048_v0 }
 0x1f0   :  { %1648 = vmatpush3.bf16.msra.mxu0 %v1850_v59 }
 0x1f1   :  { %1649 = vmatprep.subr.bf16.mxu0 %v2048_v0 }
 0x1f4   :  { %1650 = vmatpush3.bf16.msra.mxu0 %v1851_v60 }
 0x1f5   :  { %1651 = vmatprep.subr.bf16.mxu0 %v2048_v0 }
 0x1f8   :  { %1652 = vmatpush3.bf16.msra.mxu0 %v1852_v30  ;;  %v1867_v30 = vld [vmem:[#allocation5 + $0x198] sm:$0xff]  }
 0x1f9   :  { %1653 = vmatprep.subr.bf16.mxu0 %v2048_v0 }
 0x1fc   :  { %1654 = vmatpush3.bf16.msra.mxu0 %v1853_v31 }
 0x1fd   :  { %1655 = vmatprep.subr.bf16.mxu0 %v2048_v0 }
 0x200   :  { %1656 = vmatpush3.bf16.msra.mxu0 %v1854_v32 }
 0x201   :  { %1681 = vmatprep.subr.bf16.mxu0 %v2048_v0 }
 0x2a3   :  { %v403_v62 = vpop.f32.mrf.mxu0 }
 0x2a4   :  { %v404_v14 = vadd.f32 %v2224_v61, %v403_v62 }
 0x2a5   :  { %v1619_v63 = vpop.f32.mrf.mxu0 }
 0x2a6   :  { %v410_v27 = vmax.f32 %v404_v14, 0.0 }
 0x2a7   :  { %v406_v15 = vpop.f32.mrf.mxu0 }
 0x2a8   :  { %v407_v16 = vadd.f32 %v2224_v61, %v406_v15 }
 0x2a9   :  { %v1620_v26 = vpop.f32.mrf.mxu0 }
 0x2aa   :  { %v411_v28 = vmax.f32 %v407_v16, 0.0 }
 0x2ac   :  { %v2228_v29 = vpack.c.bf16 %v411_v28, %v410_v27 }
 0x2ae   :  { %1638 = vmatmul.mubr.bf16.vlgmr.msra.gmra.mxu1 %v2228_v29 }
 0x2af   :  { %1677 = vmatprep.mubr.msk.bf16.mxu1 %vm2049_vm0, %v2048_v0  ;;  %1662 = vmatpush3.bf16.msra.mxu1 %v1855_v33 }
 0x2b0   :  { %1663 = vmatprep.subr.bf16.mxu1 %v2048_v0 }
 0x2b3   :  { %1664 = vmatpush3.bf16.msra.mxu1 %v1856_v34 }
 0x2b4   :  { %1665 = vmatprep.subr.bf16.mxu1 %v2048_v0 }
 0x2b7   :  { %1666 = vmatpush3.bf16.msra.mxu1 %v1857_v38 }
 0x2b8   :  { %1667 = vmatprep.subr.bf16.mxu1 %v2048_v0 }
 0x2bb   :  { %1668 = vmatpush3.bf16.msra.mxu1 %v1858_v39 }
 0x2bc   :  { %1669 = vmatprep.subr.bf16.mxu1 %v2048_v0 }
 0x2bf   :  { %1670 = vmatpush3.bf16.msra.mxu1 %v1859_v40 }
 0x2c0   :  { %1671 = vmatprep.subr.bf16.mxu1 %v2048_v0 }
 0x36e   :  { %v520_v42 = vpop.f32.mrf.mxu1 }
 0x36f   :  { %v521_v45 = vadd.f32 %v1390_v41, %v520_v42  ;;  %v1869_v42 = vld [vmem:[#allocation5 + $0x188] sm:$0xff]  }
 0x370   :  { %v1639_v44 = vpop.f32.mrf.mxu1 }
 0x371   :  { %v527_v49 = vmax.f32 %v521_v45, 0.0  ;;  %v1870_v44 = vld [vmem:[#allocation5 + $0x180] sm:$0xff]   ;;  %v1871_v45 = vld [vmem:[#allocation5 + $0x1f8] sm:$0xff]  }
 0x372   :  { %v523_v46 = vpop.f32.mrf.mxu1 }
 0x373   :  { %v524_v47 = vadd.f32 %v1390_v41, %v523_v46  ;;  %v1872_v46 = vld [vmem:[#allocation5 + $0x1f0] sm:$0xff]  }
 0x374   :  { %v1640_v48 = vpop.f32.mrf.mxu1 }
 0x375   :  { %v528_v50 = vmax.f32 %v524_v47, 0.0  ;;  %v1873_v47 = vld [vmem:[#allocation5 + $0x1e8] sm:$0xff]   ;;  %v1875_v48 = vld [vmem:[#allocation5 + $0x1d8] sm:$0xff]  }
 0x377   :  { %v529_v51 = vpack.c.bf16 %v528_v50, %v527_v49 }
 0x379   :  { %1658 = vmatmul.mubr.bf16.vlgmr.msra.gmra.mxu0 %v529_v51 }
 0x37a   :  { %1682 = vmatpush3.bf16.msra.mxu0 %v2101_v1  ;;  %1697 = vmatprep.mubr.msk.bf16.mxu0 %vm2049_vm0, %v2048_v0  ;;  %v1860_v1 = vld [vmem:[#allocation5 + $0x150] sm:$0xff]  }
 0x37b   :  { %1683 = vmatprep.subr.bf16.mxu0 %v2048_v0  ;;  %1672 = vmatpush3.bf16.msra.mxu1 %v1860_v1 }
 0x37c   :  { %1673 = vmatprep.subr.bf16.mxu1 %v2048_v0 }
 0x37e   :  { %1684 = vmatpush3.bf16.msra.mxu0 %v2104_v2  ;;  %v1861_v2 = vld [vmem:[#allocation5 + $0x148] sm:$0xff]  }
 0x37f   :  { %1685 = vmatprep.subr.bf16.mxu0 %v2048_v0  ;;  %1674 = vmatpush3.bf16.msra.mxu1 %v1861_v2 }
 0x380   :  { %1675 = vmatprep.subr.bf16.mxu1 %v2048_v0 }
 0x382   :  { %1686 = vmatpush3.bf16.msra.mxu0 %v2108_v3  ;;  %v1862_v3 = vld [vmem:[#allocation5 + $0x140] sm:$0xff]  }
 0x383   :  { %1687 = vmatprep.subr.bf16.mxu0 %v2048_v0  ;;  %1676 = vmatpush3.bf16.msra.mxu1 %v1862_v3 }
 0x384   :  { %1701 = vmatprep.subr.bf16.mxu1 %v2048_v0 }
 0x386   :  { %1688 = vmatpush3.bf16.msra.mxu0 %v2114_v5  ;;  %v1399_v5 = vld [vmem:[#allocation7 + $0x4] ss:$0 sm:$0xff] }
 0x387   :  { %1689 = vmatprep.subr.bf16.mxu0 %v2048_v0 }
 0x38a   :  { %1690 = vmatpush3.bf16.msra.mxu0 %v2121_v7 }
 0x38b   :  { %1691 = vmatprep.subr.bf16.mxu0 %v2048_v0 }
 0x38e   :  { %1692 = vmatpush3.bf16.msra.mxu0 %v2128_v9 }
 0x38f   :  { %1693 = vmatprep.subr.bf16.mxu0 %v2048_v0 }
 0x392   :  { %1694 = vmatpush3.bf16.msra.mxu0 %v2136_v11 }
 0x393   :  { %1695 = vmatprep.subr.bf16.mxu0 %v2048_v0 }
 0x396   :  { %1696 = vmatpush3.bf16.msra.mxu0 %v2144_v13 }
 0x397   :  { %1721 = vmatprep.subr.bf16.mxu0 %v2048_v0 }
 0x439   :  { %v637_v7 = vpop.f32.mrf.mxu0 }
 0x43a   :  { %v638_v11 = vadd.f32 %v1399_v5, %v637_v7 }
 0x43b   :  { %v1659_v9 = vpop.f32.mrf.mxu0 }
 0x43c   :  { %v644_v54 = vmax.f32 %v638_v11, 0.0  ;;  %v1876_v11 = vld [vmem:[#allocation5 + $0x1d0] sm:$0xff]  }
 0x43d   :  { %v640_v52 = vpop.f32.mrf.mxu0 }
 0x43e   :  { %v641_v13 = vadd.f32 %v1399_v5, %v640_v52  ;;  %v1877_v52 = vld [vmem:[#allocation5 + $0x1c8] sm:$0xff]  }
 0x43f   :  { %v1660_v53 = vpop.f32.mrf.mxu0 }
 0x440   :  { %v645_v55 = vmax.f32 %v641_v13, 0.0  ;;  %v1878_v13 = vld [vmem:[#allocation5 + $0x1c0] sm:$0xff]   ;;  %v1879_v53 = vld [vmem:[#allocation5 + $0x238] sm:$0xff]  }
 0x442   :  { %v646_v56 = vpack.c.bf16 %v645_v55, %v644_v54  ;;  %v1880_v54 = vld [vmem:[#allocation5 + $0x230] sm:$0xff]   ;;  %v1882_v55 = vld [vmem:[#allocation5 + $0x220] sm:$0xff]  }
 0x444   :  { %1678 = vmatmul.mubr.bf16.vlgmr.msra.gmra.mxu1 %v646_v56  ;;  %v1883_v56 = vld [vmem:[#allocation5 + $0x218] sm:$0xff]  }
 0x445   :  { %1702 = vmatpush3.bf16.msra.mxu1 %v2111_v4  ;;  %1717 = vmatprep.mubr.msk.bf16.mxu1 %vm2049_vm0, %v2048_v0  ;;  %v1408_v4 = vld [vmem:[#allocation7 + $0x5] ss:$0 sm:$0xff] }
 0x446   :  { %1703 = vmatprep.subr.bf16.mxu1 %v2048_v0 }
 0x449   :  { %1704 = vmatpush3.bf16.msra.mxu1 %v2118_v6 }
 0x44a   :  { %1705 = vmatprep.subr.bf16.mxu1 %v2048_v0 }
 0x44d   :  { %1706 = vmatpush3.bf16.msra.mxu1 %v2123_v8 }
 0x44e   :  { %1707 = vmatprep.subr.bf16.mxu1 %v2048_v0 }
 0x451   :  { %1708 = vmatpush3.bf16.msra.mxu1 %v2131_v10 }
 0x452   :  { %1709 = vmatprep.subr.bf16.mxu1 %v2048_v0 }
 0x455   :  { %1710 = vmatpush3.bf16.msra.mxu1 %v2139_v12 }
 0x456   :  { %1711 = vmatprep.subr.bf16.mxu1 %v2048_v0 }
 0x459   :  { %1712 = vmatpush3.bf16.msra.mxu1 %v2155_v17 }
 0x45a   :  { %1713 = vmatprep.subr.bf16.mxu1 %v2048_v0 }
 0x45d   :  { %1714 = vmatpush3.bf16.msra.mxu1 %v2159_v18 }
 0x45e   :  { %1715 = vmatprep.subr.bf16.mxu1 %v2048_v0 }
 0x461   :  { %1716 = vmatpush3.bf16.msra.mxu1 %v2163_v19 }
 0x504   :  { %v754_v6 = vpop.f32.mrf.mxu1 }
 0x505   :  { %v755_v8 = vadd.f32 %v1408_v4, %v754_v6 }
 0x506   :  { %v1679_v10 = vpop.f32.mrf.mxu1 }
 0x507   :  { %v1417_v57 = vmul.f32 -1.442695, %v755_v8  ;;  %v1419_v8 = vld [vmem:[#allocation7 + $0x6] ss:$0 sm:$0xff] }
 0x508   :  { %v757_v58 = vpop.f32.mrf.mxu1 }
 0x509   :  { %1887 = vpow2.f32 %v1417_v57  ;;  %v758_v12 = vadd.f32 %v1408_v4, %v757_v58 }
 0x50a   :  { %v1680_v59 = vpop.f32.mrf.mxu1 }
 0x50b   :  { %v1418_v60 = vmul.f32 -1.442695, %v758_v12 }
 0x50d   :  { %1889 = vpow2.f32 %v1418_v60 }
 0x516   :  { %v1888_v17 = vpop.eup %1887 }
 0x517   :  { %v767_v62 = vadd.f32 1.0, %v1888_v17 }
 0x519   :  { %1891 = vrcp.f32 %v767_v62 }
 0x51a   :  { %v1890_v63 = vpop.eup %1889 }
 0x51b   :  { %v768_v18 = vadd.f32 1.0, %v1890_v63 }
 0x51d   :  { %1893 = vrcp.f32 %v768_v18 }
 0x526   :  { %v1892_v14 = vpop.eup %1891 }
 0x527   :  { %1308 = vst [vmem:[#allocation8] sm:$0xff] %v1892_v14 }
 0x52a   :  { %v1894_v19 = vpop.eup %1893 }
 0x52b   :  { %1309 = vst [vmem:[#allocation8 + $0x8] sm:$0xff] %v1894_v19  ;;  %v773_v15 = vpack.c.bf16 %v1894_v19, %v1892_v14 }
 0x52d   :  { %1698 = vmatmul.mubr.bf16.vlgmr.msra.gmra.mxu0 %v773_v15  ;;  %v1884_v15 = vld [vmem:[#allocation5 + $0x210] sm:$0xff]  }
 0x52e   :  { %1722 = vmatpush3.bf16.msra.mxu0 %v2167_v20  ;;  %1737 = vmatprep.mubr.msk.bf16.mxu0 %vm2049_vm0, %v2048_v0 }
 0x52f   :  { %1723 = vmatprep.subr.bf16.mxu0 %v2048_v0 }
 0x532   :  { %1724 = vmatpush3.bf16.msra.mxu0 %v2170_v21 }
 0x533   :  { %1725 = vmatprep.subr.bf16.mxu0 %v2048_v0 }
 0x536   :  { %1726 = vmatpush3.bf16.msra.mxu0 %v2174_v22 }
 0x537   :  { %1727 = vmatprep.subr.bf16.mxu0 %v2048_v0 }
 0x53a   :  { %1728 = vmatpush3.bf16.msra.mxu0 %v2178_v23 }
 0x53b   :  { %1729 = vmatprep.subr.bf16.mxu0 %v2048_v0 }
 0x53e   :  { %1730 = vmatpush3.bf16.msra.mxu0 %v2182_v24 }
 0x53f   :  { %1731 = vmatprep.subr.bf16.mxu0 %v2048_v0 }
 0x542   :  { %1732 = vmatpush3.bf16.msra.mxu0 %v2193_v35  ;;  %v1863_v35 = vld [vmem:[#allocation5 + $0x1b8] sm:$0xff]  }
 0x543   :  { %1733 = vmatprep.subr.bf16.mxu0 %v2048_v0  ;;  %1741 = vmatprep.subr.bf16.mxu1 %v1863_v35 }
 0x546   :  { %1734 = vmatpush3.bf16.msra.mxu0 %v2197_v36  ;;  %v1864_v36 = vld [vmem:[#allocation5 + $0x1b0] sm:$0xff]  }
 0x547   :  { %1735 = vmatprep.subr.bf16.mxu0 %v2048_v0  ;;  %v1865_v0 = vld [vmem:[#allocation5 + $0x1a8] sm:$0xff]  }
 0x54a   :  { %1736 = vmatpush3.bf16.msra.mxu0 %v2201_v37  ;;  %v1866_v37 = vld [vmem:[#allocation5 + $0x1a0] sm:$0xff]  }
 0x54b   :  { %1761 = vmatprep.subr.bf16.mxu0 %v1871_v45 }
 0x5ed   :  { %v808_v20 = vpop.f32.mrf.mxu0 }
 0x5ee   :  { %v809_v22 = vadd.f32 %v2187_v25, %v808_v20  ;;  %v1885_v20 = vld [vmem:[#allocation5 + $0x208] sm:$0xff]  }
 0x5ef   :  { %v1699_v21 = vpop.f32.mrf.mxu0 }
 0x5f0   :  { %v815_v26 = vmax.f32 %v809_v22, 0.0  ;;  %v1886_v21 = vld [vmem:[#allocation5 + $0x200] sm:$0xff]  }
 0x5f1   :  { %v811_v23 = vpop.f32.mrf.mxu0 }
 0x5f2   :  { %v812_v16 = vadd.f32 %v2187_v25, %v811_v23  ;;  %v1868_v25 = vld [vmem:[#allocation5 + $0x190] sm:$0xff]  }
 0x5f3   :  { %v1700_v24 = vpop.f32.mrf.mxu0 }
 0x5f4   :  { %v816_v27 = vmax.f32 %v812_v16, 0.0  ;;  %v1428_v16 = vld [vmem:[#allocation7 + $0x7] ss:$0 sm:$0xff] }
 0x5f6   :  { %v817_v28 = vpack.c.bf16 %v816_v27, %v815_v26 }
 0x5f8   :  { %1718 = vmatmul.mubr.bf16.vlgmr.msra.gmra.mxu1 %v817_v28 }
 0x5f9   :  { %1757 = vmatprep.mubr.bf16.mxu1 %v2228_v29  ;;  %1742 = vmatpush3.bf16.msra.mxu1 %v1863_v35 }
 0x5fa   :  { %1743 = vmatprep.subr.bf16.mxu1 %v1864_v36 }
 0x5fd   :  { %1744 = vmatpush3.bf16.msra.mxu1 %v1864_v36 }
 0x5fe   :  { %1745 = vmatprep.subr.bf16.mxu1 %v1865_v0 }
 0x601   :  { %1746 = vmatpush3.bf16.msra.mxu1 %v1865_v0 }
 0x602   :  { %1747 = vmatprep.subr.bf16.mxu1 %v1866_v37 }
 0x605   :  { %1748 = vmatpush3.bf16.msra.mxu1 %v1866_v37 }
 0x606   :  { %1749 = vmatprep.subr.bf16.mxu1 %v1867_v30 }
 0x609   :  { %1750 = vmatpush3.bf16.msra.mxu1 %v1867_v30 }
 0x60a   :  { %1751 = vmatprep.subr.bf16.mxu1 %v1868_v25 }
 0x60d   :  { %1752 = vmatpush3.bf16.msra.mxu1 %v1868_v25 }
 0x60e   :  { %1753 = vmatprep.subr.bf16.mxu1 %v1869_v42 }
 0x611   :  { %1754 = vmatpush3.bf16.msra.mxu1 %v1869_v42 }
 0x612   :  { %1755 = vmatprep.subr.bf16.mxu1 %v1870_v44 }
 0x615   :  { %1756 = vmatpush3.bf16.msra.mxu1 %v1870_v44 }
 0x616   :  { %1781 = vmatprep.subr.bf16.mxu1 %v1879_v53 }
 0x6b8   :  { %v852_v31 = vpop.f32.mrf.mxu1 }
 0x6b9   :  { %v853_v32 = vadd.f32 %v2210_v43, %v852_v31 }
 0x6ba   :  { %v1719_v29 = vpop.f32.mrf.mxu1 }
 0x6bb   :  { %v859_v39 = vmax.f32 %v853_v32, 0.0 }
 0x6bc   :  { %v855_v33 = vpop.f32.mrf.mxu1 }
 0x6bd   :  { %v856_v34 = vadd.f32 %v2210_v43, %v855_v33  ;;  %v1874_v43 = vld [vmem:[#allocation5 + $0x1e0] sm:$0xff]  }
 0x6be   :  { %v1720_v38 = vpop.f32.mrf.mxu1 }
 0x6bf   :  { %v860_v40 = vmax.f32 %v856_v34, 0.0 }
 0x6c1   :  { %v861_v41 = vpack.c.bf16 %v860_v40, %v859_v39 }
 0x6c3   :  { %1738 = vmatmul.mubr.bf16.vlgmr.msra.gmra.mxu0 %v861_v41 }
 0x6c4   :  { %1762 = vmatpush3.bf16.msra.mxu0 %v1871_v45 }
 0x6c5   :  { %1763 = vmatprep.subr.bf16.mxu0 %v1872_v46 }
 0x6c8   :  { %1764 = vmatpush3.bf16.msra.mxu0 %v1872_v46 }
 0x6c9   :  { %1765 = vmatprep.subr.bf16.mxu0 %v1873_v47 }
 0x6cc   :  { %1766 = vmatpush3.bf16.msra.mxu0 %v1873_v47 }
 0x6cd   :  { %1767 = vmatprep.subr.bf16.mxu0 %v1874_v43 }
 0x6d0   :  { %1768 = vmatpush3.bf16.msra.mxu0 %v1874_v43 }
 0x6d1   :  { %1769 = vmatprep.subr.bf16.mxu0 %v1875_v48 }
 0x6d4   :  { %1770 = vmatpush3.bf16.msra.mxu0 %v1875_v48 }
 0x6d5   :  { %1771 = vmatprep.subr.bf16.mxu0 %v1876_v11 }
 0x6d8   :  { %1772 = vmatpush3.bf16.msra.mxu0 %v1876_v11 }
 0x6d9   :  { %1773 = vmatprep.subr.bf16.mxu0 %v1877_v52 }
 0x6dc   :  { %1774 = vmatpush3.bf16.msra.mxu0 %v1877_v52 }
 0x6dd   :  { %1775 = vmatprep.subr.bf16.mxu0 %v1878_v13 }
 0x6e0   :  { %1776 = vmatpush3.bf16.msra.mxu0 %v1878_v13 }
 0x783   :  { %v896_v49 = vpop.f32.mrf.mxu0 }
 0x784   :  { %v897_v51 = vadd.f32 %v2224_v61, %v896_v49 }
 0x785   :  { %v1739_v50 = vpop.f32.mrf.mxu0 }
 0x786   :  { %v903_v5 = vmax.f32 %v897_v51, 0.0 }
 0x787   :  { %v899_v1 = vpop.f32.mrf.mxu0 }
 0x788   :  { %v900_v2 = vadd.f32 %v2224_v61, %v899_v1  ;;  %v1881_v61 = vld [vmem:[#allocation5 + $0x228] sm:$0xff]  }
 0x789   :  { %v1740_v3 = vpop.f32.mrf.mxu0 }
 0x78a   :  { %v904_v7 = vmax.f32 %v900_v2, 0.0 }
 0x78c   :  { %v905_v9 = vpack.c.bf16 %v904_v7, %v903_v5 }
 0x78e   :  { %1758 = vmatmul.mubr.bf16.vlgmr.msra.gmra.mxu1 %v905_v9 }
 0x78f   :  { %1782 = vmatpush3.bf16.msra.mxu1 %v1879_v53 }
 0x790   :  { %1783 = vmatprep.subr.bf16.mxu1 %v1880_v54 }
 0x793   :  { %1784 = vmatpush3.bf16.msra.mxu1 %v1880_v54 }
 0x794   :  { %1785 = vmatprep.subr.bf16.mxu1 %v1881_v61 }
 0x797   :  { %1786 = vmatpush3.bf16.msra.mxu1 %v1881_v61 }
 0x798   :  { %1787 = vmatprep.subr.bf16.mxu1 %v1882_v55 }
 0x79b   :  { %1788 = vmatpush3.bf16.msra.mxu1 %v1882_v55 }
 0x79c   :  { %1789 = vmatprep.subr.bf16.mxu1 %v1883_v56 }
 0x79f   :  { %1790 = vmatpush3.bf16.msra.mxu1 %v1883_v56 }
 0x7a0   :  { %1791 = vmatprep.subr.bf16.mxu1 %v1884_v15 }
 0x7a3   :  { %1792 = vmatpush3.bf16.msra.mxu1 %v1884_v15 }
 0x7a4   :  { %1793 = vmatprep.subr.bf16.mxu1 %v1885_v20 }
 0x7a7   :  { %1794 = vmatpush3.bf16.msra.mxu1 %v1885_v20 }
 0x7a8   :  { %1795 = vmatprep.subr.bf16.mxu1 %v1886_v21 }
 0x7ab   :  { %1796 = vmatpush3.bf16.msra.mxu1 %v1886_v21 }
 0x84e   :  { %v1759_v4 = vpop.f32.mrf.mxu1 }
 0x84f   :  { %v1022_v12 = vadd.f32 %v1759_v4, %v1419_v8 }
 0x850   :  { %v1013_v6 = vpop.f32.mrf.mxu1 }
 0x851   :  { %v1014_v57 = vadd.f32 %v1419_v8, %v1013_v6  ;;  %v1030_v18 = vmax.f32 %v1022_v12, 0.0 }
 0x852   :  { %v1760_v10 = vpop.f32.mrf.mxu1 }
 0x853   :  { %v1025_v58 = vadd.f32 %v1760_v10, %v1419_v8  ;;  %v1028_v62 = vmax.f32 %v1014_v57, 0.0 }
 0x854   :  { %v1016_v59 = vpop.f32.mrf.mxu1 }
 0x855   :  { %v1017_v60 = vadd.f32 %v1419_v8, %v1016_v59  ;;  %v1031_v17 = vmax.f32 %v1025_v58, 0.0 }
 0x857   :  { %v1029_v63 = vmax.f32 %v1017_v60, 0.0  ;;  %v1033_v19 = vpack.c.bf16 %v1031_v17, %v1030_v18 }
 0x859   :  { %v1032_v14 = vpack.c.bf16 %v1029_v63, %v1028_v62 }
 0x85b   :  { %1777 = vmatprep.mubr.bf16.mxu0 %v1032_v14 }
 0x85c   :  { %1778 = vmatmul.mubr.bf16.vlgmr.msra.gmra.mxu0 %v1033_v19 }
 0x91c   :  { %v1779_v22 = vpop.f32.mrf.mxu0 }
 0x91d   :  { %v1150_v28 = vadd.f32 %v1779_v22, %v1428_v16 }
 0x91e   :  { %v1141_v23 = vpop.f32.mrf.mxu0 }
 0x91f   :  { %v1142_v26 = vadd.f32 %v1428_v16, %v1141_v23  ;;  %v1158_v25 = vmax.f32 %v1150_v28, 0.0 }
 0x920   :  { %v1780_v24 = vpop.f32.mrf.mxu0 }
 0x921   :  { %v1153_v27 = vadd.f32 %v1780_v24, %v1428_v16  ;;  %v1156_v37 = vmax.f32 %v1142_v26, 0.0 }
 0x922   :  { %v1144_v35 = vpop.f32.mrf.mxu0 }
 0x923   :  { %v1145_v36 = vadd.f32 %v1428_v16, %v1144_v35  ;;  %v1159_v0 = vmax.f32 %v1153_v27, 0.0 }
 0x925   :  { %v1157_v30 = vmax.f32 %v1145_v36, 0.0  ;;  %v1161_v29 = vpack.c.bf16 %v1159_v0, %v1158_v25 }
 0x927   :  { %v1160_v31 = vpack.c.bf16 %v1157_v30, %v1156_v37 }
 0x929   :  { %1797 = vmatprep.mubr.bf16.mxu1 %v1160_v31 }
 0x92a   :  { %1798 = vmatmul.mubr.bf16.vlgmr.msra.gmra.mxu1 %v1161_v29 }
 0x92b   :  { %1982 = shalt.err (!%p1979_p5)
}
 0x92c   :  { %1325 = dma.vmem_to_hbm [thread:$0]  %s1320_s2, 256, %s2324_s3, [#allocation4], %s2043_s28, %s2043_s28, %s2044_s29   ;;  %v1437_v32 = vld [vmem:[#allocation7 + $0x8] ss:$0 sm:$0xff] }
 0x92d   :  { %s2051_s3 = smov [#allocation9]   ;;  %s2052_s18 = smov [#allocation11]  }
 0x92e   :  { %s1331_s17 = sshll.u32 %s2051_s3, 4  ;;  %s1343_s19 = sshll.u32 %s2052_s18, 4  ;;  %s1332_s17 = int_to_ptr.vmem [resolvable:$true] %s1331_s17  ;;  %s1344_s19 = int_to_ptr.vmem [resolvable:$true] %s1343_s19 }
 0x92f   :  { %s1991_s20 = scalar_lea.vmem %s1332_s17, 256  ;;  %p1996_p7 = scmp.lt.s32.totalorder %s1332_s17, %s1332_s17 }
 0x930   :  { %p1992_p6 = scmp.ne.s32.totalorder %s1332_s17, %s1991_s20  ;;  %p1997_p8 = scmp.lt.s32.totalorder %s1991_s20, %s1991_s20 }
 0x932   :  { %p1998_p9 = por %p1997_p8, %p1996_p7 }
 0x934   :  { %p1999_p10 = pnand %p1998_p9, %p1992_p6 }
 0x9ea   :  { %v1799_v33 = vpop.f32.mrf.mxu1 }
 0x9eb   :  { %v1278_v34 = vadd.f32 %v1799_v33, %v1437_v32 }
 0x9ec   :  { %v1269_v38 = vpop.f32.mrf.mxu1 }
 0x9ed   :  { %v1448_v39 = vmul.f32 -1.442695, %v1278_v34  ;;  %v1270_v40 = vadd.f32 %v1437_v32, %v1269_v38 }
 0x9ee   :  { %v1800_v41 = vpop.f32.mrf.mxu1 }
 0x9ef   :  { %1895 = vpow2.f32 %v1448_v39  ;;  %v1446_v42 = vmul.f32 -1.442695, %v1270_v40  ;;  %v1281_v44 = vadd.f32 %v1800_v41, %v1437_v32 }
 0x9f0   :  { %v1272_v45 = vpop.f32.mrf.mxu1 }
 0x9f1   :  { %1897 = vpow2.f32 %v1446_v42  ;;  %v1449_v46 = vmul.f32 -1.442695, %v1281_v44  ;;  %v1273_v47 = vadd.f32 %v1437_v32, %v1272_v45 }
 0x9f3   :  { %1899 = vpow2.f32 %v1449_v46  ;;  %v1447_v43 = vmul.f32 -1.442695, %v1273_v47 }
 0x9f5   :  { %1901 = vpow2.f32 %v1447_v43 }
 0x9fc   :  { %v1896_v48 = vpop.eup %1895 }
 0x9fd   :  { %v1298_v49 = vadd.f32 1.0, %v1896_v48 }
 0x9fe   :  { %v1898_v50 = vpop.eup %1897 }
 0x9ff   :  { %1903 = vrcp.f32 %v1298_v49  ;;  %v1296_v51 = vadd.f32 1.0, %v1898_v50 }
 0xa00   :  { %v1900_v1 = vpop.eup %1899 }
 0xa01   :  { %1905 = vrcp.f32 %v1296_v51  ;;  %v1299_v2 = vadd.f32 1.0, %v1900_v1 }
 0xa02   :  { %v1902_v3 = vpop.eup %1901 }
 0xa03   :  { %1907 = vrcp.f32 %v1299_v2  ;;  %v1297_v5 = vadd.f32 1.0, %v1902_v3 }
 0xa05   :  { %1909 = vrcp.f32 %v1297_v5 }
 0xa0c   :  { %v1904_v7 = vpop.eup %1903 }
 0xa0d   :  { %1312 = vst [vmem:[#allocation11] sm:$0xff] %v1904_v7 }
 0xa0e   :  { %v1906_v9 = vpop.eup %1905 }
 0xa0f   :  { %1310 = vst [vmem:[#allocation9] sm:$0xff] %v1906_v9 }
 0xa10   :  { %v1908_v11 = vpop.eup %1907 }
 0xa11   :  { %1313 = vst [vmem:[#allocation11 + $0x8] sm:$0xff] %v1908_v11 }
 0xa12   :  { %v1910_v52 = vpop.eup %1909 }
 0xa13   :  { %1311 = vst [vmem:[#allocation9 + $0x8] sm:$0xff] %v1910_v52 }
 0xa14   :  { %2002 = shalt.err (!%p1999_p10)
}
 0xa15   :  { %1337 = dma.vmem_to_hbm [thread:$0]  %s1332_s17, 256, %s2325_s4, [#allocation10], %s2043_s28, %s2043_s28, %s2044_s29  }
 0xa16   :  { %s2011_s23 = scalar_lea.vmem %s1344_s19, 256  ;;  %p2016_p12 = scmp.lt.s32.totalorder %s1344_s19, %s1344_s19 }
 0xa17   :  { %p2012_p11 = scmp.ne.s32.totalorder %s1344_s19, %s2011_s23  ;;  %p2017_p13 = scmp.lt.s32.totalorder %s2011_s23, %s2011_s23 }
 0xa19   :  { %p2018_p0 = por %p2017_p13, %p2016_p12 }
 0xa1b   :  { %p2019_p1 = pnand %p2018_p0, %p2012_p11 }
 0xa1d   :  { %2022 = shalt.err (!%p2019_p1)
}
 0xa1e   :  { %1349 = dma.vmem_to_hbm [thread:$0]  %s1344_s19, 256, %s2326_s5, [#allocation10], %s2043_s28, %s2043_s28, %s2044_s29  }
 0xa1f   :  { %2035 = dma.done.wait [#allocation4], 256  }
 0xa20   :  { %2036 = vsyncadd [#allocation4], 4294967040 }
 0xa21   :  { %2037 = dma.done.wait [#allocation10], 512  }
 0xa22   :  { %2038 = vsyncadd [#allocation10], 4294966784 }
 0xa23   :  { %1359 = vsyncpa [#allocation3], 1 }
 0xa24   :  { %1360 = vsyncpa [#allocation6], 1 }
 0xa25   :  { %1361 = vsyncpa [#allocation4], 1 }
 0xa26   :  { %1362 = vsyncpa [#allocation10], 1 }

</bundles_post_ra>
